<compile_context>
chip_gen: v7x
topology: tpu7x:2x2x1
jax: 0.10.0
libtpu: 0.0.40
codegen_flags: <defaults>
</compile_context>

<pallas_src>
import jax
import jax.numpy as jnp
import numpy as np
from jax.experimental import pallas as pl
from jax.experimental.pallas import tpu as pltpu

# ---------------------------------------------------------------------------
# Problem sizes (small, consistent with the module's forward)
# ---------------------------------------------------------------------------
B = 4                       # batch_size
C, H, W = 3, 16, 16
K_IMG = C * H * W           # 768 = 6 * 128  (lane-aligned contraction)
Q = 12                      # gps queue length
N = B + Q                   # total gps locations (gps ++ gps_queue)
D = 128                     # embedding dim (one full lane)
LOGIT_SCALE = float(np.exp(np.log(1.0 / 0.07)))   # GeoCLIP-style temperature
GPS_NOISE_SIGMA = 1000.0 / 111320.0
# TODO(synk): GeoCLIP's logit_scale is learnable; it is frozen here.


# ---------------------------------------------------------------------------
# Fused Pallas kernel: encoders + cosine logits + weighted-negative CE -> scalar
# ---------------------------------------------------------------------------
def _weighted_logits_kernel(img_ref, wimg_ref, gps_ref, wgps_ref, loss_ref):
    # --- image encoder: bf16 operands -> MXU native rate, f32 accumulate ---
    img_feat = jnp.dot(img_ref[...], wimg_ref[...],
                       preferred_element_type=jnp.float32)          # (B, D) f32

    # --- gps encoder: K=2 contraction is pure MXU drain latency, so do it as
    #     two broadcast FMAs on the VPU instead (no pad, no matmul) ---
    gps = gps_ref[...]                                              # (N, 2) f32
    wg = wgps_ref[...]                                              # (2, D) f32
    gps_feat = gps[:, 0:1] * wg[0:1, :] + gps[:, 1:2] * wg[1:2, :]  # (N, D) f32

    # --- CLIP-style L2 normalization (all f32: v5e VPU/EUP have no bf16) ---
    img_n = img_feat * jax.lax.rsqrt(
        jnp.sum(img_feat * img_feat, axis=-1, keepdims=True) + 1e-12)
    gps_n = gps_feat * jax.lax.rsqrt(
        jnp.sum(gps_feat * gps_feat, axis=-1, keepdims=True) + 1e-12)

    # --- cosine-similarity logits: contract the shared lane-dense D axis,
    #     no gps_n.T (avoids an XLU transpose to a lane-sparse layout) ---
    logits = LOGIT_SCALE * jax.lax.dot_general(
        img_n, gps_n,
        dimension_numbers=(((1,), (1,)), ((), ())),
        preferred_element_type=jnp.float32)                         # (B, N)

    b, n = logits.shape
    row = jax.lax.broadcasted_iota(jnp.int32, (b, n), 0)
    col = jax.lax.broadcasted_iota(jnp.int32, (b, n), 1)
    diag_mask = row == col                       # positive (i, i) pairs
    neg_mask = jnp.logical_not(diag_mask)        # PyTorch neg_mask

    # diagonal (positive) logits, kept unchanged in updated_logits
    diag = jnp.sum(jnp.where(diag_mask, logits, 0.0), axis=-1, keepdims=True)

    # hard_weights normalized by their per-row mean.  The ratio w / mean(w) is
    # shift-invariant, so subtract the per-row negative max before exp.
    neg_max = jnp.max(jnp.where(neg_mask, logits, -jnp.inf),
                      axis=-1, keepdims=True)
    w = jnp.where(neg_mask, jnp.exp(logits - neg_max), 0.0)
    sum_w = jnp.sum(w, axis=-1, keepdims=True)
    # exact divide (EUP/VPU have massive slack here; no approx perturbation)
    inv_mean_w = float(n - 1) / sum_w

    # updated_logits: off-diagonal entries replaced by neg_logits * (w / mean_w)
    updated = jnp.where(diag_mask, logits, logits * (w * inv_mean_w))

    # CrossEntropyLoss(targets = arange(B)), mean reduction, fused in-kernel:
    #   mean_i [ logsumexp(updated[i, :]) - updated[i, i] ]
    m = jnp.max(updated, axis=-1, keepdims=True)
    lse = m + jnp.log(jnp.sum(jnp.exp(updated - m), axis=-1, keepdims=True))
    loss_ref[0, 0] = jnp.sum(lse - diag) * (1.0 / b)                 # scalar


def weighted_logits_loss(imgs, gps_all, w_img_bf16, w_gps):
    """imgs: (B,C,H,W) f32, gps_all: (N,2) f32, w_img_bf16: (K_IMG,D) bf16,
    w_gps: (2,D) f32 -> scalar f32 loss (single fused pallas_call)."""
    b = imgs.shape[0]
    # NCHW flatten, then cast the streamed activation slab to bf16 (MXU operand)
    img_flat = imgs.reshape(b, -1).astype(jnp.bfloat16)    # (B, K_IMG) bf16
    k_img = img_flat.shape[1]
    n = gps_all.shape[0]
    d = w_img_bf16.shape[1]

    # Full-array blocks are legal because block_shape == array dims; keep the
    # lane-side dims 128-aligned so nothing silently pads.
    assert k_img % 128 == 0 and d % 128 == 0, (k_img, d)
    assert w_img_bf16.shape == (k_img, d) and w_gps.shape == (2, d)
    assert w_img_bf16.dtype == jnp.bfloat16

    cost = pl.CostEstimate(
        flops=2 * (b * k_img * d + 2 * n * d + b * d * n),
        transcendentals=2 * b * n + b + n,
        bytes_accessed=2 * (b * k_img + k_img * d)          # bf16 MXU operands
                       + 4 * (n * 2 + 2 * d + 1),           # f32 gps + scalar out
    )

    # TODO(synk): at realistic sizes (B in the hundreds, N in the thousands) this
    # must become a gridded kernel: (8,128)-aligned, lane-dense (mult-of-128 N)
    # logits tiles, a K-grid over K_IMG with a VMEM f32 accumulator as the LAST
    # ("arbitrary") axis, B/N axes "parallel" so v7x's two TensorCores split
    # rows, 256-row MXU-native tiles on v6e/v7x (128 on v5e), and tile sizes
    # re-derived against v7x's 64 MiB VMEM (double-buffering doubles each input
    # block) with vmem_limit_bytes set explicitly.
    loss = pl.pallas_call(
        _weighted_logits_kernel,
        out_shape=jax.ShapeDtypeStruct((1, 1), jnp.float32),
        in_specs=[
            pl.BlockSpec((b, k_img), lambda: (0, 0)),       # bf16
            pl.BlockSpec((k_img, d), lambda: (0, 0)),       # bf16
            pl.BlockSpec((n, 2), lambda: (0, 0)),           # f32 raw gps coords
            pl.BlockSpec((2, d), lambda: (0, 0)),           # f32 gps weight
        ],
        out_specs=pl.BlockSpec(memory_space=pltpu.MemorySpace.SMEM),
        cost_estimate=cost,
    )(img_flat, w_img_bf16, gps_all, w_gps)
    return loss[0, 0]


# ---------------------------------------------------------------------------
# NumPy reference reproducing the PyTorch masked_select / scatter semantics
# (fed the same bf16-rounded MXU operands the kernel sees)
# ---------------------------------------------------------------------------
def reference_loss(imgs_bf16_as_f32, gps_all, w_img_bf16_as_f32, w_gps):
    img_flat = np.asarray(imgs_bf16_as_f32, np.float64).reshape(B, -1)
    img = img_flat @ np.asarray(w_img_bf16_as_f32, np.float64)
    gps = np.asarray(gps_all, np.float64) @ np.asarray(w_gps, np.float64)
    img_n = img / np.sqrt((img * img).sum(-1, keepdims=True) + 1e-12)
    gps_n = gps / np.sqrt((gps * gps).sum(-1, keepdims=True) + 1e-12)
    logits = LOGIT_SCALE * (img_n @ gps_n.T)               # (B, N)

    neg_mask = np.ones_like(logits, dtype=bool)
    for i in range(B):
        neg_mask[i, i] = False
    neg_logits = logits[neg_mask].reshape(B, -1)
    hard_w = np.exp(neg_logits)
    norm_w = hard_w / hard_w.mean(-1, keepdims=True)
    updated = logits.copy()
    updated[neg_mask] = (neg_logits * norm_w).flatten()

    m = updated.max(-1, keepdims=True)
    lse = m + np.log(np.exp(updated - m).sum(-1, keepdims=True))
    pos = np.array([logits[i, i] for i in range(B)])
    return float((lse.squeeze(-1) - pos).mean())


# ---------------------------------------------------------------------------
if __name__ == "__main__":
    key = jax.random.PRNGKey(0)
    k_img, k_gps, k_queue, k_noise, k_wimg, k_wgps = jax.random.split(key, 6)

    # Inputs (deterministic)
    imgs = jax.random.normal(k_img, (B, C, H, W), dtype=jnp.float32)
    gps = jax.random.uniform(k_gps, (B, 2), minval=-1.0, maxval=1.0, dtype=jnp.float32)
    gps_queue = jax.random.uniform(k_queue, (Q, 2), minval=-1.0, maxval=1.0,
                                   dtype=jnp.float32)

    # gps_queue = gps_queue + randn_like(gps_queue) * (1000 / 111320)
    gps_queue = gps_queue + jax.random.normal(k_noise, (Q, 2)) * GPS_NOISE_SIGMA
    gps_all = jnp.concatenate([gps, gps_queue], axis=0)    # (N, 2)

    # Deterministic "model" parameters (stand-in for GeoCLIP encoders).
    # w_img is stored/streamed as bf16 (it is the dominant HBM traffic).
    w_img = (jax.random.normal(k_wimg, (K_IMG, D), dtype=jnp.float32) * 0.05
             ).astype(jnp.bfloat16)
    w_gps = jax.random.normal(k_wgps, (2, D), dtype=jnp.float32)

    loss = jax.jit(weighted_logits_loss)(imgs, gps_all, w_img, w_gps)
    loss = jax.block_until_ready(loss)

    # Reference sees the same bf16-rounded MXU operands (rounding is part of
    # the chosen storage format, not a kernel approximation).
    imgs_q = np.asarray(imgs.astype(jnp.bfloat16).astype(jnp.float32))
    w_img_q = np.asarray(w_img.astype(jnp.float32))
    ref = reference_loss(imgs_q, gps_all, w_img_q, w_gps)

    assert np.isfinite(float(loss))
    # exact reciprocal now -> tighter tolerance (only f32-accumulation noise)
    assert abs(float(loss) - ref) < 1e-3 * max(1.0, abs(ref)) + 1e-3, (float(loss), ref)

    # TODO(synk): model.dequeue_and_enqueue(gps) mutates the model's GPS queue
    # (stateful side effect) — not representable in this stateless kernel.
    print("KERNEL_OK")
</pallas_src>

<mosaic_0001>
module attributes {stable_mosaic.version = 11 : i64} {
  func.func @_weighted_logits_kernel(%arg0: memref<4x768xbf16, #tpu.memory_space<vmem>>, %arg1: memref<768x128xbf16, #tpu.memory_space<vmem>>, %arg2: memref<16x2xf32, #tpu.memory_space<vmem>>, %arg3: memref<2x128xf32, #tpu.memory_space<vmem>>, %arg4: memref<1x1xf32, #tpu.memory_space<smem>>) attributes {dimension_semantics = [], scalar_prefetch = 0 : i64, scratch_operands = 0 : i64, tpu.core_type = #tpu.core_type<tc>} {
    %c0 = arith.constant 0 : index
    %c0_0 = arith.constant 0 : index
    %0 = vector.load %arg0[%c0, %c0_0] : memref<4x768xbf16, #tpu.memory_space<vmem>>, vector<4x768xbf16>
    %c0_1 = arith.constant 0 : index
    %c0_2 = arith.constant 0 : index
    %1 = vector.load %arg1[%c0_1, %c0_2] : memref<768x128xbf16, #tpu.memory_space<vmem>>, vector<768x128xbf16>
    %cst = arith.constant dense<0.000000e+00> : vector<4x128xf32>
    %2 = tpu.matmul %0, %1, %cst {dimension_numbers = #tpu.dot_dimension_numbers<[1], [0], [0], [1], [0, 0, 1, 1], [], []>} : vector<4x768xbf16>, vector<768x128xbf16>, vector<4x128xf32> -> vector<4x128xf32>
    %c0_3 = arith.constant 0 : index
    %c0_4 = arith.constant 0 : index
    %3 = vector.load %arg2[%c0_3, %c0_4] : memref<16x2xf32, #tpu.memory_space<vmem>>, vector<16x2xf32>
    %c0_5 = arith.constant 0 : index
    %c0_6 = arith.constant 0 : index
    %4 = vector.load %arg3[%c0_5, %c0_6] : memref<2x128xf32, #tpu.memory_space<vmem>>, vector<2x128xf32>
    %5 = vector.extract_strided_slice %3 {offsets = [0, 0], sizes = [16, 1], strides = [1, 1]} : vector<16x2xf32> to vector<16x1xf32>
    %6 = vector.extract_strided_slice %4 {offsets = [0, 0], sizes = [1, 128], strides = [1, 1]} : vector<2x128xf32> to vector<1x128xf32>
    %7 = vector.broadcast %5 : vector<16x1xf32> to vector<16x128xf32>
    %8 = vector.broadcast %6 : vector<1x128xf32> to vector<16x128xf32>
    %9 = arith.mulf %7, %8 : vector<16x128xf32>
    %10 = vector.extract_strided_slice %3 {offsets = [0, 1], sizes = [16, 1], strides = [1, 1]} : vector<16x2xf32> to vector<16x1xf32>
    %11 = vector.extract_strided_slice %4 {offsets = [1, 0], sizes = [1, 128], strides = [1, 1]} : vector<2x128xf32> to vector<1x128xf32>
    %12 = vector.broadcast %10 : vector<16x1xf32> to vector<16x128xf32>
    %13 = vector.broadcast %11 : vector<1x128xf32> to vector<16x128xf32>
    %14 = arith.mulf %12, %13 : vector<16x128xf32>
    %15 = arith.addf %9, %14 : vector<16x128xf32>
    %16 = arith.mulf %2, %2 : vector<4x128xf32>
    %cst_7 = arith.constant dense<0.000000e+00> : vector<4xf32>
    %17 = vector.multi_reduction <add>, %16, %cst_7 [1] : vector<4x128xf32> to vector<4xf32>
    %18 = vector.shape_cast %17 : vector<4xf32> to vector<4x1xf32>
    %cst_8 = arith.constant 9.99999996E-13 : f32
    %19 = vector.broadcast %cst_8 : f32 to vector<4x1xf32>
    %20 = arith.addf %18, %19 : vector<4x1xf32>
    %21 = math.rsqrt %20 : vector<4x1xf32>
    %22 = vector.broadcast %21 : vector<4x1xf32> to vector<4x128xf32>
    %23 = arith.mulf %2, %22 : vector<4x128xf32>
    %24 = arith.mulf %15, %15 : vector<16x128xf32>
    %cst_9 = arith.constant dense<0.000000e+00> : vector<16xf32>
    %25 = vector.multi_reduction <add>, %24, %cst_9 [1] : vector<16x128xf32> to vector<16xf32>
    %26 = vector.shape_cast %25 : vector<16xf32> to vector<16x1xf32>
    %cst_10 = arith.constant 9.99999996E-13 : f32
    %27 = vector.broadcast %cst_10 : f32 to vector<16x1xf32>
    %28 = arith.addf %26, %27 : vector<16x1xf32>
    %29 = math.rsqrt %28 : vector<16x1xf32>
    %30 = vector.broadcast %29 : vector<16x1xf32> to vector<16x128xf32>
    %31 = arith.mulf %15, %30 : vector<16x128xf32>
    %cst_11 = arith.constant dense<0.000000e+00> : vector<4x16xf32>
    %32 = tpu.matmul %23, %31, %cst_11 {dimension_numbers = #tpu.dot_dimension_numbers<[1], [1], [0], [0], [0, 0, 1, 0], [], []>} : vector<4x128xf32>, vector<16x128xf32>, vector<4x16xf32> -> vector<4x16xf32>
    %cst_12 = arith.constant 14.2857141 : f32
    %33 = vector.broadcast %cst_12 : f32 to vector<4x16xf32>
    %34 = arith.mulf %33, %32 : vector<4x16xf32>
    %35 = tpu.iota {dimensions = array<i32: 0>} : vector<4x16xi32>
    %36 = tpu.iota {dimensions = array<i32: 1>} : vector<4x16xi32>
    %37 = arith.cmpi eq, %35, %36 : vector<4x16xi32>
    %cst_13 = arith.constant dense<true> : vector<4x16xi1>
    %38 = arith.xori %37, %cst_13 : vector<4x16xi1>
    %cst_14 = arith.constant 0.000000e+00 : f32
    %39 = vector.broadcast %cst_14 : f32 to vector<4x16xf32>
    %40 = arith.select %37, %34, %39 : vector<4x16xi1>, vector<4x16xf32>
    %cst_15 = arith.constant dense<0.000000e+00> : vector<4xf32>
    %41 = vector.multi_reduction <add>, %40, %cst_15 [1] : vector<4x16xf32> to vector<4xf32>
    %42 = vector.shape_cast %41 : vector<4xf32> to vector<4x1xf32>
    %cst_16 = arith.constant 0xFF800000 : f32
    %43 = vector.broadcast %cst_16 : f32 to vector<4x16xf32>
    %44 = arith.select %38, %34, %43 : vector<4x16xi1>, vector<4x16xf32>
    %cst_17 = arith.constant dense<0xFF800000> : vector<4xf32>
    %45 = vector.multi_reduction <maximumf>, %44, %cst_17 [1] : vector<4x16xf32> to vector<4xf32>
    %46 = vector.shape_cast %45 : vector<4xf32> to vector<4x1xf32>
    %47 = vector.broadcast %46 : vector<4x1xf32> to vector<4x16xf32>
    %48 = arith.subf %34, %47 : vector<4x16xf32>
    %49 = math.exp %48 : vector<4x16xf32>
    %cst_18 = arith.constant 0.000000e+00 : f32
    %50 = vector.broadcast %cst_18 : f32 to vector<4x16xf32>
    %51 = arith.select %38, %49, %50 : vector<4x16xi1>, vector<4x16xf32>
    %cst_19 = arith.constant dense<0.000000e+00> : vector<4xf32>
    %52 = vector.multi_reduction <add>, %51, %cst_19 [1] : vector<4x16xf32> to vector<4xf32>
    %53 = vector.shape_cast %52 : vector<4xf32> to vector<4x1xf32>
    %cst_20 = arith.constant 1.500000e+01 : f32
    %54 = vector.broadcast %cst_20 : f32 to vector<4x1xf32>
    %55 = arith.divf %54, %53 : vector<4x1xf32>
    %56 = vector.broadcast %55 : vector<4x1xf32> to vector<4x16xf32>
    %57 = arith.mulf %51, %56 : vector<4x16xf32>
    %58 = arith.mulf %34, %57 : vector<4x16xf32>
    %59 = arith.select %37, %34, %58 : vector<4x16xi1>, vector<4x16xf32>
    %cst_21 = arith.constant dense<0xFF800000> : vector<4xf32>
    %60 = vector.multi_reduction <maximumf>, %59, %cst_21 [1] : vector<4x16xf32> to vector<4xf32>
    %61 = vector.shape_cast %60 : vector<4xf32> to vector<4x1xf32>
    %62 = vector.broadcast %61 : vector<4x1xf32> to vector<4x16xf32>
    %63 = arith.subf %59, %62 : vector<4x16xf32>
    %64 = math.exp %63 : vector<4x16xf32>
    %cst_22 = arith.constant dense<0.000000e+00> : vector<4xf32>
    %65 = vector.multi_reduction <add>, %64, %cst_22 [1] : vector<4x16xf32> to vector<4xf32>
    %66 = vector.shape_cast %65 : vector<4xf32> to vector<4x1xf32>
    %67 = math.log %66 : vector<4x1xf32>
    %68 = arith.addf %61, %67 : vector<4x1xf32>
    %69 = arith.subf %68, %42 : vector<4x1xf32>
    %70 = vector.shape_cast %69 : vector<4x1xf32> to vector<1x4x1xf32>
    %cst_23 = arith.constant dense<0.000000e+00> : vector<1xf32>
    %71 = vector.multi_reduction <add>, %70, %cst_23 [1, 2] : vector<1x4x1xf32> to vector<1xf32>
    %72 = vector.shape_cast %71 : vector<1xf32> to vector<1x1x1xf32>
    %73 = vector.extract %72[0, 0, 0] : f32 from vector<1x1x1xf32>
    %cst_24 = arith.constant 2.500000e-01 : f32
    %74 = arith.mulf %73, %cst_24 : f32
    %c0_25 = arith.constant 0 : index
    %c0_26 = arith.constant 0 : index
    %75 = memref.load %arg4[%c0_25, %c0_26] : memref<1x1xf32, #tpu.memory_space<smem>>
    memref.store %74, %arg4[%c0_25, %c0_26] : memref<1x1xf32, #tpu.memory_space<smem>>
    return
  }
}

</mosaic_0001>

<bundles_post_ra>
// kernel: weighted_logits_loss.1
= control target key start
LH: loop header
LB: loop body
LE: loop exit
PB: predicated region body
PF: predicated region fallthrough
CT: control target
= control target key end

     0   :  { %v967_v2 = vmov 1   ;;  %v968_v3 = vmov 0   ;;  %v969_v25 = vmov 1983009808   ;;  %v123_v27 = vlaneseq  ;;  %s1190_s0 = inlined_call_operand.vmem [shape: bf16[4,768], index: 0, kind: input, shape index: {}]   ;;  %s1191_s1 = inlined_call_operand.vmem [shape: bf16[768,128], index: 1, kind: input, shape index: {}]   ;;  %s1192_s2 = inlined_call_operand.vmem [shape: f32[16,2], index: 2, kind: input, shape index: {}]   ;;  %s1193_s3 = inlined_call_operand.vmem [shape: f32[2,128], index: 3, kind: input, shape index: {}]   ;;  %s1194_s4 = inlined_call_operand.hbm [shape: f32[1,1], index: 4, kind: output, shape index: {}]  }
   0x1   :  { %v558_v0 = vld [vmem:[%s1192_s2] sm:$0xff]  ;;  %890 = vset.pattern.permute.xlu1 %v967_v2  ;;  %889 = vset.pattern.permute.xlu0 %v968_v3  ;;  %v559_v7 = vld [vmem:[%s1192_s2 + $0x8] sm:$0xff]  ;;  %v900_v12 = vld [vmem:[%s1191_s1 + $0x50] sm:$0xff]   ;;  %v121_v26 = vunpack.c.l.s4 %v969_v25 }
   0x2   :  { %v892_v1 = vld [vmem:[%s1191_s1 + $0x40] sm:$0xff]   ;;  %578 = vperm.xlu1 %890, %v558_v0   ;;  %563 = vperm.xlu0 %889, %v558_v0   ;;  %v896_v8 = vld [vmem:[%s1191_s1 + $0x48] sm:$0xff]   ;;  %v901_v13 = vld [vmem:[%s1191_s1 + $0xd0] sm:$0xff]   ;;  %v1082_v33 = vshrl.u32 %v123_v27, 7 }
   0x3   :  { %v893_v4 = vld [vmem:[%s1191_s1 + $0xc0] sm:$0xff]   ;;  %800 = vmatprep.subr.bf16.mxu0 %v892_v1  ;;  %v897_v9 = vld [vmem:[%s1191_s1 + $0xc8] sm:$0xff]   ;;  %v902_v14 = vld [vmem:[%s1191_s1 + $0x10] sm:$0xff]   ;;  %v122_v32 = vunpack.c.0.s8 %v121_v26 }
   0x4   :  { %v894_v5 = vld [vmem:[%s1191_s1] sm:$0xff]   ;;  %822 = vmatprep.subr.bf16.mxu1 %v893_v4  ;;  %v898_v10 = vld [vmem:[%s1191_s1 + $0x8] sm:$0xff]   ;;  %v903_v15 = vld [vmem:[%s1191_s1 + $0x90] sm:$0xff]  }
   0x5   :  { %v895_v6 = vld [vmem:[%s1191_s1 + $0x80] sm:$0xff]   ;;  %801 = vmatpush3.bf16.msra.mxu0 %v894_v5  ;;  %v899_v11 = vld [vmem:[%s1191_s1 + $0x88] sm:$0xff]   ;;  %v904_v16 = vld [vmem:[%s1191_s1 + $0x58] sm:$0xff]   ;;  %v125_v38 = vsub.s32 %v122_v32, %v1082_v33 }
   0x6   :  { %823 = vmatpush3.bf16.msra.mxu1 %v895_v6  ;;  %582 = vperm.xlu1 %890, %v559_v7   ;;  %v905_v17 = vld [vmem:[%s1191_s1 + $0xd8] sm:$0xff]   ;;  %v908_v20 = vld [vmem:[%s1191_s1 + $0x60] sm:$0xff]   ;;  %v912_v24 = vld [vmem:[%s1191_s1 + $0x68] sm:$0xff]  }
   0x7   :  { %568 = vperm.xlu0 %889, %v559_v7   ;;  %802 = vmatprep.subr.bf16.mxu0 %v896_v8  ;;  %v906_v18 = vld [vmem:[%s1191_s1 + $0x18] sm:$0xff]   ;;  %v909_v21 = vld [vmem:[%s1191_s1 + $0xe0] sm:$0xff]   ;;  %v913_v28 = vld [vmem:[%s1191_s1 + $0xe8] sm:$0xff]  }
   0x8   :  { %824 = vmatprep.subr.bf16.mxu1 %v897_v9  ;;  %v907_v19 = vld [vmem:[%s1191_s1 + $0x98] sm:$0xff]   ;;  %v910_v22 = vld [vmem:[%s1191_s1 + $0x20] sm:$0xff]   ;;  %v914_v29 = vld [vmem:[%s1191_s1 + $0x28] sm:$0xff]  }
   0x9   :  { %803 = vmatpush3.bf16.msra.mxu0 %v898_v10  ;;  %v911_v23 = vld [vmem:[%s1191_s1 + $0xa0] sm:$0xff]   ;;  %v915_v30 = vld [vmem:[%s1191_s1 + $0xa8] sm:$0xff]   ;;  %v916_v31 = vld [vmem:[%s1191_s1 + $0x70] sm:$0xff]  }
   0xa   :  { %825 = vmatpush3.bf16.msra.mxu1 %v899_v11  ;;  %804 = vmatprep.subr.bf16.mxu0 %v900_v12  ;;  %v917_v34 = vld [vmem:[%s1191_s1 + $0xf0] sm:$0xff]   ;;  %v920_v37 = vld [vmem:[%s1191_s1 + $0x78] sm:$0xff]   ;;  %v19_v42 = vld [vmem:[%s1190_s0] sm:$0xff] }
   0xb   :  { %891 = vset.pattern.permute.xlu0 %v967_v2  ;;  %826 = vmatprep.subr.bf16.mxu1 %v901_v13  ;;  %v918_v35 = vld [vmem:[%s1191_s1 + $0x30] sm:$0xff]   ;;  %v921_v39 = vld [vmem:[%s1191_s1 + $0xf8] sm:$0xff]   ;;  %v126_v43 = vrot.slane %v19_v42, %v125_v38  ;;  %v119_v44 = vcombine.high %v19_v42, %v19_v42  ;;  %v925_v45 = vld [vmem:[%s1191_s1 + $0x140] sm:$0xff]  }
   0xc   :  { %v919_v36 = vld [vmem:[%s1191_s1 + $0xb0] sm:$0xff]   ;;  %v922_v40 = vld [vmem:[%s1191_s1 + $0x38] sm:$0xff]   ;;  %v926_v48 = vld [vmem:[%s1191_s1 + $0x100] sm:$0xff]  }
   0xd   :  { %805 = vmatpush3.bf16.msra.mxu0 %v902_v14  ;;  %v923_v41 = vld [vmem:[%s1191_s1 + $0xb8] sm:$0xff]   ;;  %v134_v46 = vcombine.high %v126_v43, %v126_v43  ;;  %v133_v47 = vrot.slane %v119_v44, %v125_v38  ;;  %v927_v49 = vld [vmem:[%s1191_s1 + $0x148] sm:$0xff]   ;;  %v929_v52 = vld [vmem:[%s1191_s1 + $0x150] sm:$0xff]  }
   0xe   :  { %827 = vmatpush3.bf16.msra.mxu1 %v903_v15  ;;  %806 = vmatprep.subr.bf16.mxu0 %v904_v16  ;;  %v928_v51 = vld [vmem:[%s1191_s1 + $0x108] sm:$0xff]   ;;  %v930_v53 = vld [vmem:[%s1191_s1 + $0x110] sm:$0xff]   ;;  %v931_v54 = vld [vmem:[%s1191_s1 + $0x158] sm:$0xff]  }
   0xf   :  { %828 = vmatprep.subr.bf16.mxu1 %v905_v17  ;;  %470 = vmatprep.mubr.bf16.mxu0 %v134_v46  ;;  %v135_v50 = vcombine.high %v133_v47, %v133_v47  ;;  %v932_v55 = vld [vmem:[%s1191_s1 + $0x118] sm:$0xff]   ;;  %v933_v56 = vld [vmem:[%s1191_s1 + $0x160] sm:$0xff]   ;;  %v751_v57 = vld.sshfl [vmem:[%s1190_s0 + $0x8] sm:$0x33 pattern:$0x76325410] }
  0x10   :  { %v143_v58 = vcombine.high %v751_v57, %v751_v57 }
  0x11   :  { %807 = vmatpush3.bf16.msra.mxu0 %v906_v18  ;;  %510 = vmatprep.mubr.bf16.mxu1 %v135_v50 }
  0x12   :  { %829 = vmatpush3.bf16.msra.mxu1 %v907_v19  ;;  %808 = vmatprep.subr.bf16.mxu0 %v908_v20 }
  0x13   :  { %830 = vmatprep.subr.bf16.mxu1 %v909_v21 }
  0x15   :  { %809 = vmatpush3.bf16.msra.mxu0 %v910_v22 }
  0x16   :  { %831 = vmatpush3.bf16.msra.mxu1 %v911_v23  ;;  %810 = vmatprep.subr.bf16.mxu0 %v912_v24 }
  0x17   :  { %832 = vmatprep.subr.bf16.mxu1 %v913_v28 }
  0x19   :  { %811 = vmatpush3.bf16.msra.mxu0 %v914_v29 }
  0x1a   :  { %833 = vmatpush3.bf16.msra.mxu1 %v915_v30  ;;  %812 = vmatprep.subr.bf16.mxu0 %v916_v31 }
  0x1b   :  { %834 = vmatprep.subr.bf16.mxu1 %v917_v34 }
  0x1d   :  { %813 = vmatpush3.bf16.msra.mxu0 %v918_v35 }
  0x1e   :  { %835 = vmatpush3.bf16.msra.mxu1 %v919_v36  ;;  %814 = vmatprep.subr.bf16.mxu0 %v920_v37 }
  0x1f   :  { %836 = vmatprep.subr.bf16.mxu1 %v921_v39 }
  0x21   :  { %815 = vmatpush3.bf16.msra.mxu0 %v922_v40 }
  0x22   :  { %837 = vmatpush3.bf16.msra.mxu1 %v923_v41  ;;  %844 = vmatprep.subr.bf16.mxu0 %v925_v45 }
  0x24   :  { %471 = vmatmul.mubr.bf16.vlgmr.msra.gmra.mrb[0].mxu0 %v126_v43 }
  0x25   :  { %845 = vmatpush3.bf16.msra.mxu0 %v926_v48  ;;  %511 = vmatmul.mubr.bf16.vlgmr.msra.gmra.mrb[0].mxu1 %v133_v47 }
  0x26   :  { %846 = vmatprep.subr.bf16.mxu0 %v927_v49 }
  0x29   :  { %847 = vmatpush3.bf16.msra.mxu0 %v928_v51 }
  0x2a   :  { %848 = vmatprep.subr.bf16.mxu0 %v929_v52 }
  0x2d   :  { %849 = vmatpush3.bf16.msra.mxu0 %v930_v53 }
  0x2e   :  { %850 = vmatprep.subr.bf16.mxu0 %v931_v54 }
  0x2f   :  { %9 = vsyncpa [#allocation3], 0  ;;  %v934_v59 = vld [vmem:[%s1191_s1 + $0x120] sm:$0xff]   ;;  %v935_v60 = vld [vmem:[%s1191_s1 + $0x168] sm:$0xff]   ;;  %550 = vmatprep.mubr.bf16.mxu0 %v143_v58  ;;  %v587_v2 = vsub.s32 1, %v1082_v33  ;;  %v573_v3 = vsub.s32 0, %v1082_v33 }
  0x30   :  { %v936_v61 = vld [vmem:[%s1191_s1 + $0x128] sm:$0xff]   ;;  %v937_v62 = vld [vmem:[%s1191_s1 + $0x170] sm:$0xff]   ;;  %v939_v0 = vld [vmem:[%s1191_s1 + $0x178] sm:$0xff]   ;;  %v970_v19 = vmov 0.0|0.0   ;;  %vm594_vm0 = vcmask 1043456   ;;  %vm971_vm1 = vmmov 0  }
  0x31   :  { %851 = vmatpush3.bf16.msra.mxu0 %v932_v55  ;;  %v938_v63 = vld [vmem:[%s1191_s1 + $0x130] sm:$0xff]   ;;  %v940_v1 = vld [vmem:[%s1191_s1 + $0x138] sm:$0xff]   ;;  %v560_v4 = vld [vmem:[%s1193_s3] sm:$0x3]  ;;  %876 = vmatprep.subr.bf16.mxu1 %v970_v19  ;;  %v972_v50 = vmov 0.0   ;;  %v687_v55 = vand.u32 127, %v123_v27 }
  0x32   :  { %852 = vmatprep.subr.bf16.mxu0 %v933_v56  ;;  %v588_v5 = vrot.slane %v560_v4, %v587_v2  ;;  %v574_v6 = vrot.slane %v560_v4, %v573_v3  ;;  %873 = vmatprep.mubr.msk.f32.mxu1 %vm971_vm1, %v972_v50  ;;  %vm973_vm3 = vmmov 1   ;;  %vm691_vm5 = vcmask 125952   ;;  %s955_s14 = scalar_lea.hbm %s1194_s4, 16 }
  0x33   :  { %vm688_vm2 = vcmp.eq.s32.totalorder %v1082_v33, %v687_v55  ;;  %vm724_vm6 = vcmask 3072   ;;  %p956_p0 = scmp.ne.s32.totalorder %s1194_s4, %s955_s14  ;;  %p959_p1 = scmp.lt.u32.totalorder %s955_s14, %s1194_s4 }
  0x34   :  { %vm689_vm4 = vmxor %vm688_vm2, %vm973_vm3 }
  0x35   :  { %853 = vmatpush3.bf16.msra.mxu0 %v934_v59  ;;  %p961_p2 = pnand %p959_p1, %p956_p0 }
  0x36   :  { %854 = vmatprep.subr.bf16.mxu0 %v935_v60 }
  0x39   :  { %855 = vmatpush3.bf16.msra.mxu0 %v936_v61 }
  0x3a   :  { %856 = vmatprep.subr.bf16.mxu0 %v937_v62 }
  0x3d   :  { %857 = vmatpush3.bf16.msra.mxu0 %v938_v63 }
  0x3e   :  { %858 = vmatprep.subr.bf16.mxu0 %v939_v0 }
  0x41   :  { %859 = vmatpush3.bf16.msra.mxu0 %v940_v1 }
  0x44   :  { %551 = vmatmul.mubr.bf16.vlgmr.msra.gmra.mrb[4].mxu0 %v751_v57 }
  0x81   :  { %v579_v7 = vpop.permute.xlu1 %578  ;;  %v564_v8 = vpop.permute.xlu0 %563 }
  0x82   :  { %v589_v9 = vmul.f32 %v588_v5, %v579_v7  ;;  %v575_v10 = vmul.f32 %v574_v6, %v564_v8 }
  0x84   :  { %v591_v11 = vadd.f32 %v589_v9, %v575_v10 }
  0x85   :  { %v583_v12 = vpop.permute.xlu1 %582 }
  0x86   :  { %v590_v13 = vmul.f32 %v588_v5, %v583_v12  ;;  %v569_v14 = vpop.permute.xlu0 %568  ;;  %v601_v15 = vmul.f32 %v591_v11, %v591_v11 }
  0x87   :  { %v576_v16 = vmul.f32 %v574_v6, %v569_v14 }
  0x88   :  { %603 = vadd.xlane.f32.xlu0 %v601_v15 }
  0x89   :  { %v592_v17 = vadd.f32 %v590_v13, %v576_v16 }
  0x8b   :  { %v602_v18 = vmul.f32 %v592_v17, %v592_v17 }
  0x8d   :  { %605 = vadd.xlane.f32.xlu1 %v602_v18 }
  0xf7   :  { %v816_v20 = vpop.f32.mrb[0].mxu0 }
  0xf8   :  { %v817_v21 = vpop.f32.mrb[1].mxu0  ;;  %v838_v22 = vpop.f32.mrb[0].mxu1 }
  0xf9   :  { %v818_v23 = vadd.f32 %v817_v21, %v816_v20  ;;  %v819_v24 = vpop.f32.mrb[2].mxu0  ;;  %v839_v25 = vpop.f32.mrb[1].mxu1 }
  0xfa   :  { %v820_v26 = vpop.f32.mrb[3].mxu0  ;;  %v840_v28 = vadd.f32 %v839_v25, %v838_v22  ;;  %v841_v29 = vpop.f32.mrb[2].mxu1 }
  0xfb   :  { %v842_v30 = vpop.f32.mrb[3].mxu1 }
  0xfc   :  { %v513_v31 = vadd.f32 %v840_v28, %v818_v23 }
 0x115   :  { %v604_v32 = vpop.xlane.xlu0 %603 }
 0x116   :  { %v607_v34 = vadd.f32 1e-12, %v604_v32 }
 0x117   :  { %v860_v35 = vpop.f32.mrb[4].mxu0 }
 0x118   :  { %v861_v36 = vpop.f32.mrb[5].mxu0  ;;  %941 = vrsqrt.f32 %v607_v34 }
 0x119   :  { %v862_v38 = vadd.f32 %v861_v36, %v860_v35  ;;  %v863_v39 = vpop.f32.mrb[6].mxu0 }
 0x11a   :  { %v606_v37 = vpop.xlane.xlu1 %605  ;;  %v864_v41 = vpop.f32.mrb[7].mxu0 }
 0x11b   :  { %v608_v40 = vadd.f32 1e-12, %v606_v37  ;;  %v553_v42 = vadd.f32 %v862_v38, %v513_v31 }
 0x11d   :  { %943 = vrsqrt.f32 %v608_v40  ;;  %v593_v43 = vmul.f32 %v553_v42, %v553_v42 }
 0x11f   :  { %v595_v44 = vsel %vm594_vm0, %v593_v43, 0.0 }
 0x120   :  { %596 = vadd.xlane.f32.xlu0 %v595_v44 }
 0x122   :  { %v942_v45 = vpop.eup %941 }
 0x123   :  { %v611_v47 = vmul.f32 %v942_v45, %v591_v11 }
 0x127   :  { %v944_v46 = vpop.eup %943 }
 0x128   :  { %v612_v48 = vmul.f32 %v944_v46, %v592_v17 }
 0x12a   :  { %v877_v49 = vpack.c.bf16 %v612_v48, %v611_v47 }
 0x12c   :  { %878 = vmatpush3.bf16.xpose.msra.mxu1 %v877_v49 }
 0x1ad   :  { %v597_v51 = vpop.xlane.xlu0 %596 }
 0x1ae   :  { %v598_v52 = vadd.f32 1e-12, %v597_v51 }
 0x1b0   :  { %945 = vrsqrt.f32 %v598_v52 }
 0x1ba   :  { %v946_v53 = vpop.eup %945 }
 0x1bb   :  { %v600_v54 = vmul.f32 %v946_v53, %v553_v42 }
 0x1bd   :  { %874 = vmatmul.mubr.f32.vlgmr.msra.gmra.mrb[4].mxu1 %v600_v54 }
 0x290   :  { %v679_v56 = vpop.f32.mrb[4].mxu1 }
 0x291   :  { %v683_v57 = vmul.f32 14.285714, %v679_v56  ;;  %v875_v58 = vpop.f32.mrb[5].mxu1 }
 0x293   :  { %v695_v59 = vsel %vm689_vm4, %v683_v57, -inf  ;;  %v690_v9 = vsel %vm688_vm2, %v683_v57, 0.0 }
 0x294   :  { %v696_v60 = vsel %vm691_vm5, %v695_v59, -inf  ;;  %v692_v10 = vsel %vm691_vm5, %v690_v9, 0.0 }
 0x295   :  { %697 = vmax.xlane.f32.xlu0 %v696_v60 }
 0x322   :  { %v698_v61 = vpop.xlane.xlu0 %697 }
 0x323   :  { %v699_v62 = vsub.f32 %v683_v57, %v698_v61 }
 0x325   :  { %v700_v63 = vmul.f32 1.442695, %v699_v62 }
 0x327   :  { %947 = vpow2.f32 %v700_v63 }
 0x331   :  { %v948_v0 = vpop.eup %947 }
 0x332   :  { %v702_v27 = vsel %vm689_vm4, %v948_v0, 0.0 }
 0x333   :  { %v703_v1 = vsel %vm691_vm5, %v702_v27, 0.0 }
 0x334   :  { %704 = vadd.xlane.f32.xlu1 %v703_v1 }
 0x3c1   :  { %v705_v2 = vpop.xlane.xlu1 %704 }
 0x3c2   :  { %949 = vrcp.f32 %v705_v2 }
 0x3cc   :  { %v950_v3 = vpop.eup %949 }
 0x3cd   :  { %v707_v4 = vmul.f32 15.0, %v950_v3 }
 0x3cf   :  { %v708_v5 = vmul.f32 %v707_v4, %v702_v27 }
 0x3d1   :  { %v709_v6 = vmul.f32 %v708_v5, %v683_v57 }
 0x3d3   :  { %v710_v7 = vsel %vm688_vm2, %v683_v57, %v709_v6 }
 0x3d4   :  { %v711_v8 = vsel %vm691_vm5, %v710_v7, -inf }
 0x3d5   :  { %712 = vmax.xlane.f32.xlu0 %v711_v8 }
 0x3d9   :  { %693 = vadd.xlane.f32.xlu0 %v692_v10 }
 0x462   :  { %v713_v11 = vpop.xlane.xlu0 %712 }
 0x463   :  { %v714_v12 = vsub.f32 %v710_v7, %v713_v11 }
 0x465   :  { %v715_v13 = vmul.f32 1.442695, %v714_v12 }
 0x466   :  { %v694_v20 = vpop.xlane.xlu0 %693 }
 0x467   :  { %951 = vpow2.f32 %v715_v13 }
 0x471   :  { %v952_v14 = vpop.eup %951 }
 0x472   :  { %v717_v15 = vsel %vm691_vm5, %v952_v14, 0.0 }
 0x473   :  { %718 = vadd.xlane.f32.xlu1 %v717_v15 }
 0x500   :  { %v719_v16 = vpop.xlane.xlu1 %718 }
 0x501   :  { %953 = vlog2.f32 %v719_v16 }
 0x50b   :  { %v954_v17 = vpop.eup %953 }
 0x50c   :  { %v721_v18 = vmul.f32 0.6931472, %v954_v17 }
 0x50e   :  { %v722_v19 = vadd.f32 %v721_v18, %v713_v11 }
 0x510   :  { %v723_v33 = vsub.f32 %v722_v19, %v694_v20 }
 0x512   :  { %v725_v21 = vsel %vm724_vm6, %v723_v33, 0.0 }
 0x513   :  { %726 = vadd.xlane.f32.xlu1 %v725_v21 }
 0x5a0   :  { %v727_v22 = vpop.xlane.xlu1 %726 }
 0x5a1   :  { %v728_v23 = vrot.slane %v727_v22, 4 }
 0x5a3   :  { %v729_v24 = vadd.f32 %v728_v23, %v727_v22 }
 0x5a5   :  { %v730_v25 = vrot.slane %v729_v24, 2 }
 0x5a7   :  { %v731_v26 = vadd.f32 %v730_v25, %v729_v24 }
 0x5a9   :  { %v732_v28 = vrot.slane %v731_v26, 1 }
 0x5ab   :  { %v733_v29 = vadd.f32 %v732_v28, %v731_v26 }
 0x5ad   :  { %879 = vpush %v733_v29 }
 0x5de   :  { %s880_s1 = spop %879 }
 0x5df   :  { %s735_s3 = smul.f32 0.25, %s880_s1 }
 0x5e1   :  { %737 = sst [smem:[#allocation2]] %s735_s3 }
 0x5e2   :  { %964 = shalt.err (!%p961_p2)
}
 0x5e3   :  { %s974_s19 = smov [#allocation2]  }
 0x5e4   :  { %745 = dma.smem_to_hbm %s974_s19, 16, %s1194_s4, [#allocation3]  }
 0x5e5   :  { %965 = dma.done.wait [#allocation3], 16  }
 0x5e6   :  { %966 = vsyncadd [#allocation3], 4294967280 }
 0x5e7   :  { %749 = sfence }
 0x5e8   :  { %750 = vsyncpa [#allocation3], 1 }

</bundles_post_ra>
